<compile_context>
chip_gen: v5e
topology: v5e:2x2
jax: 0.10.0
libtpu: 0.0.40
codegen_flags: <defaults>
</compile_context>

<pallas_src>
import functools
import math

import jax
import jax.numpy as jnp
from jax.experimental import pallas as pl
from jax.experimental.pallas import tpu as pltpu  # noqa: F401  (kept for perf-option variants)


# ----------------------------------------------------------------------------
# helpers
# ----------------------------------------------------------------------------
def _softmax_last(x):
    m = jnp.max(x, axis=-1, keepdims=True)
    e = jnp.exp(x - m)
    return e / jnp.sum(e, axis=-1, keepdims=True)


# ----------------------------------------------------------------------------
# Pallas kernel: the whole batch in one invocation.
#   x_ref        : (R, C)      rows ordered (b, l, n), lane axis = channels (C = head*d_k)
#   wqv_ref      : (C, 2C)     concat(Wq^T | Wv^T)
#   bqv_ref      : (1, 2C)
#   wc_ref       : (C, C)      Wc^T
#   bc_ref       : (1, C)
#   keyt_ref     : (G*C, R)    block-diag (over (b,l) blocks) softmaxed key^T
#   ones_bd_ref  : (C, C)      1 where lane groups (d_k blocks) match  (softmax denominators)
#   mask_bd_ref  : (G*C, C)    per-head block-diagonal mask, tiled over the G blocks
#   expand_ref   : (R, G*C)    1 where row's (b,l) block matches the lane super-block
# ----------------------------------------------------------------------------
def _make_kernel(C, G, d_k):
    inv_sqrt_dk = 1.0 / math.sqrt(d_k)

    def kernel(x_ref, wqv_ref, bqv_ref, wc_ref, bc_ref,
               keyt_ref, ones_bd_ref, mask_bd_ref, expand_ref, o_ref):
        X = x_ref[...].astype(jnp.float32)                                   # (R, C)

        # Fused Q|V 1x1 conv: one wide MXU dot, bias, ReLU.
        qv = jnp.dot(X, wqv_ref[...], preferred_element_type=jnp.float32) + bqv_ref[...]
        qv = jnp.maximum(qv, 0.0)                                            # (R, 2C)
        q = qv[:, :C]                                                        # 128-lane aligned
        v = qv[:, C:]                                                        # slices (no shuffle)

        # Per-head softmax over d_k at full lane width.
        #   Row-wide max is a valid shift (softmax shift-invariant within each group and
        #   row max >= group max -> exp never overflows); group sums via block-diag ones.
        qsc = q * inv_sqrt_dk
        m = jnp.max(qsc, axis=-1, keepdims=True)                             # XLU reduce
        e = jnp.exp(qsc - m)                                                 # EUP
        denom = jnp.dot(e, ones_bd_ref[...], preferred_element_type=jnp.float32)
        qs = e / denom            # pl.reciprocal(denom, approx=True) once tolerance relaxed

        # kv for every (b,l) block at once:  (G*C, R) @ (R, C) -> (G*C, C),
        # then keep only the per-head diagonal (dk x dk) blocks.
        kv = jnp.dot(keyt_ref[...], v, preferred_element_type=jnp.float32)
        kv = kv * mask_bd_ref[...]                                           # VPU mask

        # attn[r] = qs[r] @ kv_block(b(r)) for all rows, as one (R,G*C)@(G*C,C) matmul.
        qs_exp = jnp.concatenate([qs] * G, axis=-1) * expand_ref[...]        # (R, G*C)
        attn = jnp.dot(qs_exp, kv, preferred_element_type=jnp.float32)       # (R, C)

        # Output 1x1 conv + ReLU.
        y = jnp.dot(attn, wc_ref[...], preferred_element_type=jnp.float32) + bc_ref[...]
        o_ref[...] = jnp.maximum(y, 0.0).astype(o_ref.dtype)

    return kernel


# ----------------------------------------------------------------------------
# Wrapper
# ----------------------------------------------------------------------------
@functools.partial(jax.jit, static_argnames=("head",))
def pattern_aware_attention_forward(x, params, head):
    """x: (B, C, N, L) float32.  params: Wq/Wv/Wc (C,C), bq/bv/bc (C,), s_bank (head,L,Nmax,d_k)."""
    B, C, N, L = x.shape
    d_k = C // head
    G = B * L                      # number of independent (batch, l) attention blocks
    R = G * N                      # total rows

    # Layout plumbing: rows = (b, l, n), lane axis = channels (lane-dense, C = 128 here).
    x_rows = jnp.transpose(x, (0, 3, 2, 1)).reshape(R, C)

    # --- batch-independent constants, hoisted out of the kernel -----------------------
    key_soft = _softmax_last(params["s_bank"][:, :, :N, :] / math.sqrt(d_k))   # (H, L, N, dk)
    keyT_per_l = jnp.transpose(key_soft, (1, 0, 3, 2)).reshape(L, C, N)        # (L, C, N)
    keyt_big = jnp.zeros((G * C, R), jnp.float32)                              # block-diag key^T
    for g in range(G):                                                         # G is tiny & static
        keyt_big = keyt_big.at[g * C:(g + 1) * C, g * N:(g + 1) * N].set(keyT_per_l[g % L])

    grp = jnp.arange(C) // d_k
    ones_bd = (grp[:, None] == grp[None, :]).astype(jnp.float32)               # (C, C)
    mask_bd = jnp.tile(ones_bd, (G, 1))                                        # (G*C, C)
    rb = jnp.arange(R) // N
    cb = jnp.arange(G * C) // C
    expand_mask = (rb[:, None] == cb[None, :]).astype(jnp.float32)             # (R, G*C)

    wqv_t = jnp.concatenate([params["Wq"].T, params["Wv"].T], axis=1)          # (C, 2C)
    b_qv = jnp.concatenate([params["bq"], params["bv"]]).reshape(1, 2 * C)
    wc_t = params["Wc"].T
    b_c = params["bc"].reshape(1, C)

    kernel = _make_kernel(C, G, d_k)

    # Single invocation, no grid: every operand is a whole-array VMEM block.
    out_rows = pl.pallas_call(
        kernel,
        out_shape=jax.ShapeDtypeStruct((R, C), x.dtype),
    )(x_rows, wqv_t, b_qv, wc_t, b_c, keyt_big, ones_bd, mask_bd, expand_mask)

    # Back to PyTorch layout (B, C, N, L).
    return jnp.transpose(out_rows.reshape(B, L, N, C), (0, 3, 2, 1))


# ----------------------------------------------------------------------------
# Pure-JAX reference (mirrors the PyTorch forward, dropout = identity)
# ----------------------------------------------------------------------------
def pattern_aware_attention_ref(x, params, head):
    B, C, N, L = x.shape
    d_k = C // head

    def conv1x1_relu(z, W, b):
        y = jnp.einsum("oc,bcnl->bonl", W, z) + b[None, :, None, None]
        return jnp.maximum(y, 0.0)

    q = conv1x1_relu(x, params["Wq"], params["bq"])
    v = conv1x1_relu(x, params["Wv"], params["bv"])
    q = q.reshape(B, head, d_k, N, L).transpose(0, 1, 4, 3, 2)   # (B,H,L,N,dk)
    v = v.reshape(B, head, d_k, N, L).transpose(0, 1, 4, 3, 2)
    key = jax.nn.softmax(params["s_bank"][:, :, :N, :] / math.sqrt(d_k), axis=-1)
    q = jax.nn.softmax(q / math.sqrt(d_k), axis=-1)
    kv = jnp.einsum("hlnx,bhlny->bhlxy", key, v)
    attn = jnp.einsum("bhlnx,bhlxy->bhlny", q, kv)
    xo = attn.transpose(0, 1, 4, 3, 2).reshape(B, C, N, L)
    return conv1x1_relu(xo, params["Wc"], params["bc"])


if __name__ == "__main__":
    # Small shapes consistent with the module: input (B, d_model, num_nodes, seq_length).
    B, d_model, num_nodes, seq_length, head = 2, 128, 16, 1, 4
    d_k = d_model // head

    root = jax.random.PRNGKey(0)
    ks = jax.random.split(root, 8)

    x = jax.random.normal(ks[0], (B, d_model, num_nodes, seq_length), dtype=jnp.float32)

    def conv_init(kw, kb, C):
        bound = 1.0 / math.sqrt(C)   # 1x1 conv fan_in = C
        W = jax.random.uniform(kw, (C, C), jnp.float32, -bound, bound)
        b = jax.random.uniform(kb, (C,), jnp.float32, -bound, bound)
        return W, b

    Wq, bq = conv_init(ks[1], ks[2], d_model)
    Wv, bv = conv_init(ks[3], ks[4], d_model)
    Wc, bc = conv_init(ks[5], ks[6], d_model)

    # xavier_uniform-style init for s_bank1 (head, L, num_nodes, d_k)
    xav = math.sqrt(6.0 / (num_nodes + d_k))
    s_bank = jax.random.uniform(
        ks[7], (head, seq_length, num_nodes, d_k), jnp.float32, -xav, xav)

    params = dict(Wq=Wq, bq=bq, Wv=Wv, bv=bv, Wc=Wc, bc=bc, s_bank=s_bank)

    out = pattern_aware_attention_forward(x, params, head)
    out = jax.block_until_ready(out)

    ref = pattern_aware_attention_ref(x, params, head)
    assert out.shape == (B, d_model, num_nodes, seq_length)
    max_err = jnp.max(jnp.abs(out - ref))
    assert jnp.allclose(out, ref, rtol=1e-4, atol=1e-4), f"max abs err = {max_err}"

    print("KERNEL_OK")
</pallas_src>

<mosaic_0001>
module attributes {stable_mosaic.version = 11 : i64} {
  func.func @kernel(%arg0: memref<32x128xf32, #tpu.memory_space<vmem>>, %arg1: memref<128x256xf32, #tpu.memory_space<vmem>>, %arg2: memref<1x256xf32, #tpu.memory_space<vmem>>, %arg3: memref<128x128xf32, #tpu.memory_space<vmem>>, %arg4: memref<1x128xf32, #tpu.memory_space<vmem>>, %arg5: memref<256x32xf32, #tpu.memory_space<vmem>>, %arg6: memref<128x128xf32, #tpu.memory_space<vmem>>, %arg7: memref<256x128xf32, #tpu.memory_space<vmem>>, %arg8: memref<32x256xf32, #tpu.memory_space<vmem>>, %arg9: memref<32x128xf32, #tpu.memory_space<vmem>>) attributes {dimension_semantics = [], scalar_prefetch = 0 : i64, scratch_operands = 0 : i64, tpu.core_type = #tpu.core_type<tc>} {
    %c0 = arith.constant 0 : index
    %c0_0 = arith.constant 0 : index
    %0 = vector.load %arg0[%c0, %c0_0] : memref<32x128xf32, #tpu.memory_space<vmem>>, vector<32x128xf32>
    %c0_1 = arith.constant 0 : index
    %c0_2 = arith.constant 0 : index
    %1 = vector.load %arg1[%c0_1, %c0_2] : memref<128x256xf32, #tpu.memory_space<vmem>>, vector<128x256xf32>
    %cst = arith.constant dense<0.000000e+00> : vector<32x256xf32>
    %2 = tpu.matmul %0, %1, %cst {dimension_numbers = #tpu.dot_dimension_numbers<[1], [0], [0], [1], [0, 0, 1, 1], [], []>} : vector<32x128xf32>, vector<128x256xf32>, vector<32x256xf32> -> vector<32x256xf32>
    %c0_3 = arith.constant 0 : index
    %c0_4 = arith.constant 0 : index
    %3 = vector.load %arg2[%c0_3, %c0_4] : memref<1x256xf32, #tpu.memory_space<vmem>>, vector<1x256xf32>
    %4 = vector.broadcast %3 : vector<1x256xf32> to vector<32x256xf32>
    %5 = arith.addf %2, %4 : vector<32x256xf32>
    %cst_5 = arith.constant 0.000000e+00 : f32
    %6 = vector.broadcast %cst_5 : f32 to vector<32x256xf32>
    %7 = arith.maximumf %5, %6 : vector<32x256xf32>
    %8 = vector.extract_strided_slice %7 {offsets = [0, 0], sizes = [32, 128], strides = [1, 1]} : vector<32x256xf32> to vector<32x128xf32>
    %9 = vector.extract_strided_slice %7 {offsets = [0, 128], sizes = [32, 128], strides = [1, 1]} : vector<32x256xf32> to vector<32x128xf32>
    %cst_6 = arith.constant 0.176776692 : f32
    %10 = vector.broadcast %cst_6 : f32 to vector<32x128xf32>
    %11 = arith.mulf %8, %10 : vector<32x128xf32>
    %cst_7 = arith.constant dense<0xFF800000> : vector<32xf32>
    %12 = vector.multi_reduction <maximumf>, %11, %cst_7 [1] : vector<32x128xf32> to vector<32xf32>
    %13 = vector.shape_cast %12 : vector<32xf32> to vector<32x1xf32>
    %14 = vector.broadcast %13 : vector<32x1xf32> to vector<32x128xf32>
    %15 = arith.subf %11, %14 : vector<32x128xf32>
    %16 = math.exp %15 : vector<32x128xf32>
    %c0_8 = arith.constant 0 : index
    %c0_9 = arith.constant 0 : index
    %17 = vector.load %arg6[%c0_8, %c0_9] : memref<128x128xf32, #tpu.memory_space<vmem>>, vector<128x128xf32>
    %cst_10 = arith.constant dense<0.000000e+00> : vector<32x128xf32>
    %18 = tpu.matmul %16, %17, %cst_10 {dimension_numbers = #tpu.dot_dimension_numbers<[1], [0], [0], [1], [0, 0, 1, 1], [], []>} : vector<32x128xf32>, vector<128x128xf32>, vector<32x128xf32> -> vector<32x128xf32>
    %19 = arith.divf %16, %18 : vector<32x128xf32>
    %c0_11 = arith.constant 0 : index
    %c0_12 = arith.constant 0 : index
    %20 = vector.load %arg5[%c0_11, %c0_12] : memref<256x32xf32, #tpu.memory_space<vmem>>, vector<256x32xf32>
    %cst_13 = arith.constant dense<0.000000e+00> : vector<256x128xf32>
    %21 = tpu.matmul %20, %9, %cst_13 {dimension_numbers = #tpu.dot_dimension_numbers<[1], [0], [0], [1], [0, 0, 1, 1], [], []>} : vector<256x32xf32>, vector<32x128xf32>, vector<256x128xf32> -> vector<256x128xf32>
    %c0_14 = arith.constant 0 : index
    %c0_15 = arith.constant 0 : index
    %22 = vector.load %arg7[%c0_14, %c0_15] : memref<256x128xf32, #tpu.memory_space<vmem>>, vector<256x128xf32>
    %23 = arith.mulf %21, %22 : vector<256x128xf32>
    %24 = tpu.concatenate %19, %19 in 1 : vector<32x128xf32>, vector<32x128xf32> -> vector<32x256xf32>
    %c0_16 = arith.constant 0 : index
    %c0_17 = arith.constant 0 : index
    %25 = vector.load %arg8[%c0_16, %c0_17] : memref<32x256xf32, #tpu.memory_space<vmem>>, vector<32x256xf32>
    %26 = arith.mulf %24, %25 : vector<32x256xf32>
    %cst_18 = arith.constant dense<0.000000e+00> : vector<32x128xf32>
    %27 = tpu.matmul %26, %23, %cst_18 {dimension_numbers = #tpu.dot_dimension_numbers<[1], [0], [0], [1], [0, 0, 1, 1], [], []>} : vector<32x256xf32>, vector<256x128xf32>, vector<32x128xf32> -> vector<32x128xf32>
    %c0_19 = arith.constant 0 : index
    %c0_20 = arith.constant 0 : index
    %28 = vector.load %arg3[%c0_19, %c0_20] : memref<128x128xf32, #tpu.memory_space<vmem>>, vector<128x128xf32>
    %cst_21 = arith.constant dense<0.000000e+00> : vector<32x128xf32>
    %29 = tpu.matmul %27, %28, %cst_21 {dimension_numbers = #tpu.dot_dimension_numbers<[1], [0], [0], [1], [0, 0, 1, 1], [], []>} : vector<32x128xf32>, vector<128x128xf32>, vector<32x128xf32> -> vector<32x128xf32>
    %c0_22 = arith.constant 0 : index
    %c0_23 = arith.constant 0 : index
    %30 = vector.load %arg4[%c0_22, %c0_23] : memref<1x128xf32, #tpu.memory_space<vmem>>, vector<1x128xf32>
    %31 = vector.broadcast %30 : vector<1x128xf32> to vector<32x128xf32>
    %32 = arith.addf %29, %31 : vector<32x128xf32>
    %cst_24 = arith.constant 0.000000e+00 : f32
    %33 = vector.broadcast %cst_24 : f32 to vector<32x128xf32>
    %34 = arith.maximumf %32, %33 : vector<32x128xf32>
    %c0_25 = arith.constant 0 : index
    %c0_26 = arith.constant 0 : index
    %35 = vector.load %arg9[%c0_25, %c0_26] : memref<32x128xf32, #tpu.memory_space<vmem>>, vector<32x128xf32>
    tpu.vector_store %arg9[%c0_25, %c0_26], %34 {strides = array<i32>} : memref<32x128xf32, #tpu.memory_space<vmem>>, vector<32x128xf32>,
    return
  }
}

</mosaic_0001>

<bundles_post_ra>
// kernel: pattern_aware_attention_forward.1
= control target key start
LH: loop header
LB: loop body
LE: loop exit
PB: predicated region body
PF: predicated region fallthrough
CT: control target
= control target key end

     0   :  { %s1485_s0 = inlined_call_operand.vmem [shape: f32[32,128], index: 0, kind: input, shape index: {}]   ;;  %s1486_s1 = inlined_call_operand.vmem [shape: f32[128,256], index: 1, kind: input, shape index: {}]   ;;  %s1487_s2 = inlined_call_operand.vmem [shape: f32[1,256], index: 2, kind: input, shape index: {}]   ;;  %s1488_s3 = inlined_call_operand.vmem [shape: f32[128,128], index: 3, kind: input, shape index: {}]   ;;  %s1489_s4 = inlined_call_operand.vmem [shape: f32[1,128], index: 4, kind: input, shape index: {}]   ;;  %s1490_s5 = inlined_call_operand.vmem [shape: f32[256,32], index: 5, kind: input, shape index: {}]   ;;  %s1491_s6 = inlined_call_operand.vmem [shape: f32[128,128], index: 6, kind: input, shape index: {}]   ;;  %s1492_s7 = inlined_call_operand.vmem [shape: f32[256,128], index: 7, kind: input, shape index: {}]   ;;  %s1493_s8 = inlined_call_operand.vmem [shape: f32[32,256], index: 8, kind: input, shape index: {}]   ;;  %s1494_s9 = inlined_call_operand.hbm [shape: f32[32,128], index: 9, kind: output, shape index: {}]  }
   0x1   :  { %v67_v0 = vld [vmem:[%s1486_s1 + $0xf0] sm:$0xff]  ;;  %v65_v1 = vld [vmem:[%s1486_s1 + $0xe0] sm:$0xff] }
   0x2   :  { %75 = vmatpush.msra.mxu1 %v67_v0  ;;  %v63_v2 = vld [vmem:[%s1486_s1 + $0xd0] sm:$0xff]  ;;  %v61_v3 = vld [vmem:[%s1486_s1 + $0xc0] sm:$0xff] }
   0x3   :  { %v59_v4 = vld [vmem:[%s1486_s1 + $0xb0] sm:$0xff] }
   0x4   :  { %76 = vmatpush.msra.mxu1 %v65_v1 }
   0x6   :  { %77 = vmatpush.msra.mxu1 %v63_v2 }
   0x8   :  { %78 = vmatpush.msra.mxu1 %v61_v3 }
   0x9   :  { %14 = vsyncpa [#allocation3], 0  ;;  %v57_v5 = vld [vmem:[%s1486_s1 + $0xa0] sm:$0xff]  ;;  %v55_v6 = vld [vmem:[%s1486_s1 + $0x90] sm:$0xff]  ;;  %vm302_vm0 = vcmask 261120   ;;  %s713_s24 = sshll.u32 %s1494_s9, 4  ;;  %s714_s24 = int_to_ptr.hbm [resolvable:$true] %s713_s24 }
   0xa   :  { %79 = vmatpush.msra.mxu1 %v59_v4  ;;  %v53_v7 = vld [vmem:[%s1486_s1 + $0x80] sm:$0xff]  ;;  %v51_v8 = vld [vmem:[%s1486_s1 + $0x70] sm:$0xff]  ;;  %v68_v17 = vld [vmem:[%s1486_s1 + $0xf8] sm:$0xff]  ;;  %s809_s25 = smov 8  }
   0xb   :  { %v49_v9 = vld [vmem:[%s1486_s1 + $0x60] sm:$0xff]  ;;  %v47_v10 = vld [vmem:[%s1486_s1 + $0x50] sm:$0xff]  ;;  %v66_v18 = vld [vmem:[%s1486_s1 + $0xe8] sm:$0xff] }
   0xc   :  { %80 = vmatpush.msra.mxu1 %v57_v5  ;;  %v45_v11 = vld [vmem:[%s1486_s1 + $0x40] sm:$0xff]  ;;  %v43_v12 = vld [vmem:[%s1486_s1 + $0x30] sm:$0xff]  ;;  %v64_v19 = vld [vmem:[%s1486_s1 + $0xd8] sm:$0xff] }
   0xd   :  { %v41_v13 = vld [vmem:[%s1486_s1 + $0x20] sm:$0xff]  ;;  %v39_v14 = vld [vmem:[%s1486_s1 + $0x10] sm:$0xff]  ;;  %v62_v20 = vld [vmem:[%s1486_s1 + $0xc8] sm:$0xff] }
   0xe   :  { %81 = vmatpush.msra.mxu1 %v55_v6  ;;  %v37_v15 = vld [vmem:[%s1486_s1] sm:$0xff]  ;;  %v34_v21 = vld [vmem:[%s1485_s0 + $0x8] sm:$0xff]  ;;  %v60_v22 = vld [vmem:[%s1486_s1 + $0xb8] sm:$0xff] }
   0xf   :  { %v33_v16 = vld [vmem:[%s1485_s0] sm:$0xff]  ;;  %v58_v23 = vld [vmem:[%s1486_s1 + $0xa8] sm:$0xff]  ;;  %v56_v24 = vld [vmem:[%s1486_s1 + $0x98] sm:$0xff] }
  0x10   :  { %82 = vmatpush.msra.mxu1 %v53_v7  ;;  %v54_v25 = vld [vmem:[%s1486_s1 + $0x88] sm:$0xff]  ;;  %v35_v26 = vld [vmem:[%s1485_s0 + $0x10] sm:$0xff]  ;;  %v52_v27 = vld [vmem:[%s1486_s1 + $0x78] sm:$0xff] }
  0x11   :  { %v50_v28 = vld [vmem:[%s1486_s1 + $0x68] sm:$0xff]  ;;  %v48_v29 = vld [vmem:[%s1486_s1 + $0x58] sm:$0xff]  ;;  %v69_v36 = vld [vmem:[%s1487_s2] sm:$0x3] }
  0x12   :  { %83 = vmatpush.msra.mxu1 %v51_v8  ;;  %v46_v30 = vld [vmem:[%s1486_s1 + $0x48] sm:$0xff]  ;;  %v36_v31 = vld [vmem:[%s1485_s0 + $0x18] sm:$0xff]  ;;  %v71_v37 = vperm.slane %v69_v36, 0  ;;  %v72_v57 = vperm.slane %v69_v36, 1  ;;  %v270_v3 = vld [vmem:[%s1490_s5] sm:$0xff] }
  0x13   :  { %v44_v32 = vld [vmem:[%s1486_s1 + $0x38] sm:$0xff]  ;;  %v42_v33 = vld [vmem:[%s1486_s1 + $0x28] sm:$0xff]  ;;  %v286_v4 = vld [vmem:[%s1490_s5 + $0x80] sm:$0xff] }
  0x14   :  { %84 = vmatpush.msra.mxu1 %v49_v9  ;;  %v40_v34 = vld [vmem:[%s1486_s1 + $0x18] sm:$0xff]  ;;  %v38_v35 = vld [vmem:[%s1486_s1 + $0x8] sm:$0xff]  ;;  %v179_v6 = vld [vmem:[%s1491_s6 + $0x70] sm:$0xff] }
  0x15   :  { %v180_v5 = vld [vmem:[%s1491_s6 + $0x78] sm:$0xff]  ;;  %v178_v7 = vld [vmem:[%s1491_s6 + $0x68] sm:$0xff] }
  0x16   :  { %85 = vmatpush.msra.mxu1 %v47_v10  ;;  %181 = vmatpush.msra.mxu2 %v180_v5  ;;  %v271_v8 = vld [vmem:[%s1490_s5 + $0x8] sm:$0xff]  ;;  %v177_v10 = vld [vmem:[%s1491_s6 + $0x60] sm:$0xff] }
  0x17   :  { %v287_v9 = vld [vmem:[%s1490_s5 + $0x88] sm:$0xff] }
  0x18   :  { %86 = vmatpush.msra.mxu1 %v45_v11  ;;  %182 = vmatpush.msra.mxu2 %v179_v6  ;;  %v176_v11 = vld [vmem:[%s1491_s6 + $0x58] sm:$0xff] }
  0x1a   :  { %87 = vmatpush.msra.mxu1 %v43_v12  ;;  %183 = vmatpush.msra.mxu2 %v178_v7  ;;  %v175_v12 = vld [vmem:[%s1491_s6 + $0x50] sm:$0xff] }
  0x1c   :  { %88 = vmatpush.msra.mxu1 %v41_v13  ;;  %184 = vmatpush.msra.mxu2 %v177_v10  ;;  %v174_v13 = vld [vmem:[%s1491_s6 + $0x48] sm:$0xff] }
  0x1e   :  { %89 = vmatpush.msra.mxu1 %v39_v14  ;;  %185 = vmatpush.msra.mxu2 %v176_v11  ;;  %v272_v14 = vld [vmem:[%s1490_s5 + $0x10] sm:$0xff] }
  0x20   :  { %90 = vmatpush.msra.mxu1 %v37_v15  ;;  %v288_v15 = vld [vmem:[%s1490_s5 + $0x90] sm:$0xff]  ;;  %186 = vmatpush.msra.mxu2 %v175_v12 }
  0x21   :  { %91 = vmatmul.f32.vlgmr.msra.gmra.mxu1 %v33_v16 }
  0x22   :  { %104 = vmatpush.msrb.mxu1 %v68_v17  ;;  %187 = vmatpush.msra.mxu2 %v174_v13  ;;  %v172_v17 = vld [vmem:[%s1491_s6 + $0x38] sm:$0xff] }
  0x24   :  { %105 = vmatpush.msrb.mxu1 %v66_v18  ;;  %v171_v18 = vld [vmem:[%s1491_s6 + $0x30] sm:$0xff] }
  0x26   :  { %106 = vmatpush.msrb.mxu1 %v64_v19  ;;  %v273_v19 = vld [vmem:[%s1490_s5 + $0x18] sm:$0xff] }
  0x28   :  { %107 = vmatpush.msrb.mxu1 %v62_v20  ;;  %v289_v20 = vld [vmem:[%s1490_s5 + $0x98] sm:$0xff] }
  0x29   :  { %94 = vmatmul.f32.gmra.mxu1 %v34_v21 }
  0x2a   :  { %108 = vmatpush.msrb.mxu1 %v60_v22  ;;  %v169_v22 = vld [vmem:[%s1491_s6 + $0x20] sm:$0xff] }
  0x2c   :  { %109 = vmatpush.msrb.mxu1 %v58_v23  ;;  %v168_v23 = vld [vmem:[%s1491_s6 + $0x18] sm:$0xff] }
  0x2e   :  { %110 = vmatpush.msrb.mxu1 %v56_v24  ;;  %v167_v24 = vld [vmem:[%s1491_s6 + $0x10] sm:$0xff] }
  0x30   :  { %111 = vmatpush.msrb.mxu1 %v54_v25  ;;  %v274_v25 = vld [vmem:[%s1490_s5 + $0x20] sm:$0xff] }
  0x31   :  { %97 = vmatmul.f32.gmra.mxu1 %v35_v26 }
  0x32   :  { %112 = vmatpush.msrb.mxu1 %v52_v27  ;;  %v166_v27 = vld [vmem:[%s1491_s6 + $0x8] sm:$0xff] }
  0x34   :  { %113 = vmatpush.msrb.mxu1 %v50_v28  ;;  %v165_v28 = vld [vmem:[%s1491_s6] sm:$0xff] }
  0x36   :  { %114 = vmatpush.msrb.mxu1 %v48_v29  ;;  %v275_v29 = vld [vmem:[%s1490_s5 + $0x28] sm:$0xff] }
  0x38   :  { %115 = vmatpush.msrb.mxu1 %v46_v30  ;;  %v291_v30 = vld [vmem:[%s1490_s5 + $0xa8] sm:$0xff] }
  0x39   :  { %100 = vmatmul.f32.gmra.mxu1 %v36_v31 }
  0x3a   :  { %116 = vmatpush.msrb.mxu1 %v44_v32  ;;  %v292_v32 = vld [vmem:[%s1490_s5 + $0xb0] sm:$0xff] }
  0x3c   :  { %117 = vmatpush.msrb.mxu1 %v42_v33  ;;  %v277_v33 = vld [vmem:[%s1490_s5 + $0x38] sm:$0xff] }
  0x3e   :  { %118 = vmatpush.msrb.mxu1 %v40_v34  ;;  %v293_v34 = vld [vmem:[%s1490_s5 + $0xb8] sm:$0xff] }
  0x40   :  { %119 = vmatpush.msrb.mxu1 %v38_v35 }
  0x41   :  { %120 = vmatmul.f32.vlgmr.msrb.gmra.mxu1 %v33_v16  ;;  %v173_v16 = vld [vmem:[%s1491_s6 + $0x40] sm:$0xff] }
  0x42   :  { %188 = vmatpush.msra.mxu2 %v173_v16 }
  0x44   :  { %189 = vmatpush.msra.mxu2 %v172_v17 }
  0x46   :  { %190 = vmatpush.msra.mxu2 %v171_v18 }
  0x49   :  { %123 = vmatmul.f32.gmra.mxu1 %v34_v21  ;;  %v170_v21 = vld [vmem:[%s1491_s6 + $0x28] sm:$0xff] }
  0x4a   :  { %191 = vmatpush.msra.mxu2 %v170_v21 }
  0x4c   :  { %192 = vmatpush.msra.mxu2 %v169_v22 }
  0x4e   :  { %193 = vmatpush.msra.mxu2 %v168_v23 }
  0x50   :  { %194 = vmatpush.msra.mxu2 %v167_v24 }
  0x51   :  { %126 = vmatmul.f32.gmra.mxu1 %v35_v26  ;;  %v290_v26 = vld [vmem:[%s1490_s5 + $0xa0] sm:$0xff] }
  0x52   :  { %195 = vmatpush.msra.mxu2 %v166_v27 }
  0x54   :  { %196 = vmatpush.msra.mxu2 %v165_v28 }
  0x59   :  { %129 = vmatmul.f32.gmra.mxu1 %v36_v31  ;;  %v276_v31 = vld [vmem:[%s1490_s5 + $0x30] sm:$0xff] }
  0x9e   :  { %v92_v38 = vpop.f32.mrf.mxu1 }
  0x9f   :  { %v93_v39 = vadd.f32 %v92_v38, %v71_v37  ;;  %v278_v38 = vld [vmem:[%s1490_s5 + $0x40] sm:$0xff] }
  0xa1   :  { %v133_v40 = vmax.f32 %v93_v39, 0.0  ;;  %v294_v39 = vld [vmem:[%s1490_s5 + $0xc0] sm:$0xff] }
  0xa3   :  { %v971_v41 = vmul.f32 0.17677669, %v133_v40 }
  0xa5   :  { %145 = vmax.xlane.f32.xlu0 %v971_v41 }
  0xa6   :  { %v95_v42 = vpop.f32.mrf.mxu1 }
  0xa7   :  { %v96_v43 = vadd.f32 %v95_v42, %v71_v37 }
  0xa9   :  { %v135_v44 = vmax.f32 %v96_v43, 0.0 }
  0xab   :  { %v974_v45 = vmul.f32 0.17677669, %v135_v44  ;;  %v279_v44 = vld [vmem:[%s1490_s5 + $0x48] sm:$0xff] }
  0xad   :  { %147 = vmax.xlane.f32.xlu0 %v974_v45 }
  0xae   :  { %v98_v46 = vpop.f32.mrf.mxu1 }
  0xaf   :  { %v99_v47 = vadd.f32 %v98_v46, %v71_v37  ;;  %v295_v46 = vld [vmem:[%s1490_s5 + $0xc8] sm:$0xff] }
  0xb1   :  { %v137_v48 = vmax.f32 %v99_v47, 0.0 }
  0xb3   :  { %v977_v49 = vmul.f32 0.17677669, %v137_v48 }
  0xb5   :  { %149 = vmax.xlane.f32.xlu1 %v977_v49 }
  0xb6   :  { %v101_v50 = vpop.f32.mrf.mxu1 }
  0xb7   :  { %v102_v51 = vadd.f32 %v101_v50, %v71_v37 }
  0xb9   :  { %v139_v52 = vmax.f32 %v102_v51, 0.0  ;;  %v280_v51 = vld [vmem:[%s1490_s5 + $0x50] sm:$0xff] }
  0xbb   :  { %v980_v53 = vmul.f32 0.17677669, %v139_v52  ;;  %v296_v52 = vld [vmem:[%s1490_s5 + $0xd0] sm:$0xff] }
  0xbd   :  { %151 = vmax.xlane.f32.xlu1 %v980_v53 }
  0xbe   :  { %v121_v54 = vpop.f32.mrf.mxu1 }
  0xbf   :  { %v122_v63 = vadd.f32 %v121_v54, %v72_v57 }
  0xc1   :  { %v134_v2 = vmax.f32 %v122_v63, 0.0  ;;  %v284_v63 = vld [vmem:[%s1490_s5 + $0x70] sm:$0xff] }
  0xc6   :  { %v124_v55 = vpop.f32.mrf.mxu1 }
  0xc7   :  { %v125_v61 = vadd.f32 %v124_v55, %v72_v57 }
  0xc9   :  { %v136_v1 = vmax.f32 %v125_v61, 0.0  ;;  %v283_v61 = vld [vmem:[%s1490_s5 + $0x68] sm:$0xff] }
  0xce   :  { %v127_v56 = vpop.f32.mrf.mxu1 }
  0xcf   :  { %v128_v59 = vadd.f32 %v127_v56, %v72_v57 }
  0xd1   :  { %v138_v0 = vmax.f32 %v128_v59, 0.0  ;;  %v282_v59 = vld [vmem:[%s1490_s5 + $0x60] sm:$0xff] }
  0xd6   :  { %v130_v58 = vpop.f32.mrf.mxu1 }
  0xd7   :  { %v131_v60 = vadd.f32 %v130_v58, %v72_v57  ;;  %v281_v57 = vld [vmem:[%s1490_s5 + $0x58] sm:$0xff] }
  0xd8   :  { %v297_v58 = vld [vmem:[%s1490_s5 + $0xd8] sm:$0xff] }
  0xd9   :  { %v140_v62 = vmax.f32 %v131_v60, 0.0  ;;  %v298_v60 = vld [vmem:[%s1490_s5 + $0xe0] sm:$0xff] }
  0xdb   :  { %411 = vmatpush.msra.mxu0 %v140_v62  ;;  %757 = vmatpush.msra.mxu3 %v140_v62  ;;  %v299_v62 = vld [vmem:[%s1490_s5 + $0xe8] sm:$0xff] }
  0xdd   :  { %412 = vmatpush.msra.mxu0 %v138_v0  ;;  %758 = vmatpush.msra.mxu3 %v138_v0  ;;  %v300_v0 = vld [vmem:[%s1490_s5 + $0xf0] sm:$0xff] }
  0xdf   :  { %413 = vmatpush.msra.mxu0 %v136_v1  ;;  %759 = vmatpush.msra.mxu3 %v136_v1  ;;  %v285_v1 = vld [vmem:[%s1490_s5 + $0x78] sm:$0xff] }
  0xe1   :  { %414 = vmatpush.msra.mxu0 %v134_v2  ;;  %760 = vmatpush.msra.mxu3 %v134_v2  ;;  %v301_v2 = vld [vmem:[%s1490_s5 + $0xf8] sm:$0xff] }
  0xe2   :  { %725 = vmatmul.msk.f32.vlgmr.msra.gmra.mxu0 %vm302_vm0, %v270_v3  ;;  %741 = vmatmul.msk.f32.vlgmr.msra.gmra.mxu3 %vm302_vm0, %v286_v4 }
  0xea   :  { %726 = vmatmul.msk.f32.gmra.mxu0 %vm302_vm0, %v271_v8  ;;  %742 = vmatmul.msk.f32.gmra.mxu3 %vm302_vm0, %v287_v9 }
  0xf2   :  { %727 = vmatmul.msk.f32.gmra.mxu0 %vm302_vm0, %v272_v14  ;;  %743 = vmatmul.msk.f32.gmra.mxu3 %vm302_vm0, %v288_v15 }
  0xfa   :  { %728 = vmatmul.msk.f32.gmra.mxu0 %vm302_vm0, %v273_v19  ;;  %744 = vmatmul.msk.f32.gmra.mxu3 %vm302_vm0, %v289_v20 }
 0x102   :  { %729 = vmatmul.msk.f32.gmra.mxu0 %vm302_vm0, %v274_v25  ;;  %745 = vmatmul.msk.f32.gmra.mxu3 %vm302_vm0, %v290_v26 }
 0x10a   :  { %730 = vmatmul.msk.f32.gmra.mxu0 %vm302_vm0, %v275_v29  ;;  %746 = vmatmul.msk.f32.gmra.mxu3 %vm302_vm0, %v291_v30 }
 0x112   :  { %731 = vmatmul.msk.f32.gmra.mxu0 %vm302_vm0, %v276_v31  ;;  %747 = vmatmul.msk.f32.gmra.mxu3 %vm302_vm0, %v292_v32 }
 0x118   :  { %v146_v35 = vpop.xlane.xlu0 %145 }
 0x119   :  { %v153_v36 = vsub.f32 %v971_v41, %v146_v35  ;;  %v527_v35 = vld [vmem:[%s1492_s7 + $0x78] sm:$0xff] }
 0x11a   :  { %732 = vmatmul.msk.f32.gmra.mxu0 %vm302_vm0, %v277_v33  ;;  %748 = vmatmul.msk.f32.gmra.mxu3 %vm302_vm0, %v293_v34 }
 0x11b   :  { %v157_v37 = vmul.f32 1.442695, %v153_v36  ;;  %v526_v36 = vld [vmem:[%s1492_s7 + $0x70] sm:$0xff] }
 0x11d   :  { %765 = vpow2.f32 %v157_v37 }
 0x120   :  { %v148_v40 = vpop.xlane.xlu0 %147 }
 0x121   :  { %v154_v42 = vsub.f32 %v974_v45, %v148_v40 }
 0x122   :  { %733 = vmatmul.msk.f32.gmra.mxu0 %vm302_vm0, %v278_v38  ;;  %749 = vmatmul.msk.f32.gmra.mxu3 %vm302_vm0, %v294_v39  ;;  %v525_v39 = vld [vmem:[%s1492_s7 + $0x68] sm:$0xff] }
 0x123   :  { %v1105_v41 = vpop.eup %765  ;;  %v159_v43 = vmul.f32 1.442695, %v154_v42 }
 0x124   :  { %197 = vmatmul.f32.vlgmr.msra.gmra.mxu2 %v1105_v41 }
 0x125   :  { %767 = vpow2.f32 %v159_v43  ;;  %v524_v43 = vld [vmem:[%s1492_s7 + $0x60] sm:$0xff] }
 0x128   :  { %v150_v47 = vpop.xlane.xlu1 %149 }
 0x129   :  { %v155_v45 = vsub.f32 %v977_v49, %v150_v47 }
 0x12a   :  { %734 = vmatmul.msk.f32.gmra.mxu0 %vm302_vm0, %v279_v44  ;;  %750 = vmatmul.msk.f32.gmra.mxu3 %vm302_vm0, %v295_v46  ;;  %v543_v44 = vld [vmem:[%s1492_s7 + $0xf8] sm:$0xff] }
 0x12b   :  { %v1117_v48 = vpop.eup %767  ;;  %v161_v50 = vmul.f32 1.442695, %v155_v45  ;;  %v523_v45 = vld [vmem:[%s1492_s7 + $0x58] sm:$0xff] }
 0x12c   :  { %200 = vmatmul.f32.gmra.mxu2 %v1117_v48 }
 0x12d   :  { %769 = vpow2.f32 %v161_v50  ;;  %v542_v50 = vld [vmem:[%s1492_s7 + $0xf0] sm:$0xff] }
 0x130   :  { %v152_v54 = vpop.xlane.xlu1 %151 }
 0x131   :  { %v156_v49 = vsub.f32 %v980_v53, %v152_v54 }
 0x132   :  { %735 = vmatmul.msk.f32.gmra.mxu0 %vm302_vm0, %v280_v51  ;;  %751 = vmatmul.msk.f32.gmra.mxu3 %vm302_vm0, %v296_v52 }
 0x133   :  { %v1129_v55 = vpop.eup %769  ;;  %v163_v56 = vmul.f32 1.442695, %v156_v49  ;;  %v522_v49 = vld [vmem:[%s1492_s7 + $0x50] sm:$0xff] }
 0x134   :  { %203 = vmatmul.f32.gmra.mxu2 %v1129_v55 }
 0x135   :  { %771 = vpow2.f32 %v163_v56 }
 0x13a   :  { %736 = vmatmul.msk.f32.gmra.mxu0 %vm302_vm0, %v281_v57  ;;  %752 = vmatmul.msk.f32.gmra.mxu3 %vm302_vm0, %v297_v58  ;;  %v541_v57 = vld [vmem:[%s1492_s7 + $0xe8] sm:$0xff] }
 0x13b   :  { %v1140_v53 = vpop.eup %771 }
 0x13c   :  { %206 = vmatmul.f32.gmra.mxu2 %v1140_v53 }
 0x142   :  { %737 = vmatmul.msk.f32.gmra.mxu0 %vm302_vm0, %v282_v59  ;;  %753 = vmatmul.msk.f32.gmra.mxu3 %vm302_vm0, %v298_v60 }
 0x14a   :  { %738 = vmatmul.msk.f32.gmra.mxu0 %vm302_vm0, %v283_v61  ;;  %754 = vmatmul.msk.f32.gmra.mxu3 %vm302_vm0, %v299_v62  ;;  %v521_v61 = vld [vmem:[%s1492_s7 + $0x48] sm:$0xff]  ;;  %v540_v62 = vld [vmem:[%s1492_s7 + $0xe0] sm:$0xff] }
 0x152   :  { %739 = vmatmul.msk.f32.gmra.mxu0 %vm302_vm0, %v284_v63  ;;  %755 = vmatmul.msk.f32.gmra.mxu3 %vm302_vm0, %v300_v0 }
 0x15a   :  { %740 = vmatmul.msk.f32.gmra.mxu0 %vm302_vm0, %v285_v1  ;;  %756 = vmatmul.msk.f32.gmra.mxu3 %vm302_vm0, %v301_v2  ;;  %v520_v2 = vld [vmem:[%s1492_s7 + $0x40] sm:$0xff] }
 0x15f   :  { %v1175_v3 = vpop.f32.mrf.mxu0 }
 0x165   :  { %v1177_v4 = vpop.f32.mrf.mxu3 }
 0x167   :  { %v1179_v5 = vpop.f32.mrf.mxu0 }
 0x16d   :  { %v1181_v6 = vpop.f32.mrf.mxu3 }
 0x16f   :  { %v1183_v7 = vpop.f32.mrf.mxu0 }
 0x175   :  { %v1185_v8 = vpop.f32.mrf.mxu3 }
 0x177   :  { %v1187_v9 = vpop.f32.mrf.mxu0 }
 0x17d   :  { %v1189_v10 = vpop.f32.mrf.mxu3 }
 0x17f   :  { %v1191_v11 = vpop.f32.mrf.mxu0 }
 0x185   :  { %v1193_v12 = vpop.f32.mrf.mxu3 }
 0x187   :  { %v1195_v13 = vpop.f32.mrf.mxu0 }
 0x18d   :  { %v1197_v14 = vpop.f32.mrf.mxu3 }
 0x18f   :  { %v1199_v15 = vpop.f32.mrf.mxu0 }
 0x195   :  { %v1201_v16 = vpop.f32.mrf.mxu3 }
 0x197   :  { %v1203_v17 = vpop.f32.mrf.mxu0 }
 0x19d   :  { %v1205_v18 = vpop.f32.mrf.mxu3 }
 0x19f   :  { %v1207_v19 = vpop.f32.mrf.mxu0 }
 0x1a5   :  { %v1209_v20 = vpop.f32.mrf.mxu3 }
 0x1a7   :  { %v443_v21 = vpop.f32.mrf.mxu0  ;;  %v1215_v30 = vpop.f32.mrf.mxu2 }
 0x1a8   :  { %773 = vrcp.f32 %v1215_v30  ;;  %vm215_vm2 = vweird.f32 %v1215_v30 }
 0x1ad   :  { %v1211_v22 = vpop.f32.mrf.mxu3 }
 0x1ae   :  { %v1229_v40 = vpop.eup %773 }
 0x1af   :  { %v446_v23 = vpop.f32.mrf.mxu0  ;;  %v1218_v33 = vpop.f32.mrf.mxu2  ;;  %v211_v47 = vmul.f32 %v1229_v40, %v1215_v30  ;;  %vm216_vm1 = vweird.f32 %v1229_v40 }
 0x1b0   :  { %775 = vrcp.f32 %v1218_v33  ;;  %v554_v0 = vmul.f32 %v522_v49, %v446_v23  ;;  %v519_v23 = vld [vmem:[%s1492_s7 + $0x38] sm:$0xff]  ;;  %vm1314_vm3 = vmor %vm215_vm2, %vm216_vm1  ;;  %vm230_vm6 = vweird.f32 %v1218_v33 }
 0x1b1   :  { %v212_v60 = vsub.f32 1.0, %v211_v47  ;;  %v516_v47 = vld [vmem:[%s1492_s7 + $0x20] sm:$0xff] }
 0x1b2   :  { %v548_v49 = vmul.f32 %v516_v47, %v1191_v11  ;;  %v663_v47 = vld [vmem:[%s1488_s3 + $0x68] sm:$0xff] }
 0x1b5   :  { %v1213_v24 = vpop.f32.mrf.mxu3 }
 0x1b6   :  { %v1260_v63 = vpop.eup %775 }
 0x1b7   :  { %v449_v25 = vpop.f32.mrf.mxu0  ;;  %v1249_v56 = vpop.f32.mrf.mxu2  ;;  %vm231_vm5 = vweird.f32 %v1260_v63 }
 0x1b8   :  { %v555_v58 = vmul.f32 %v523_v45, %v449_v25  ;;  %v539_v25 = vld [vmem:[%s1492_s7 + $0xd8] sm:$0xff]  ;;  %777 = vrcp.f32 %v1249_v56  ;;  %vm1370_vm7 = vmor %vm230_vm6, %vm231_vm5  ;;  %vm245_vm10 = vweird.f32 %v1249_v56 }
 0x1b9   :  { %v535_v45 = vld [vmem:[%s1492_s7 + $0xb8] sm:$0xff] }
 0x1bd   :  { %v497_v26 = vpop.f32.mrf.mxu3 }
 0x1bf   :  { %v452_v27 = vpop.f32.mrf.mxu0 }
 0x1c0   :  { %v556_v52 = vmul.f32 %v524_v43, %v452_v27  ;;  %v553_v27 = vmul.f32 %v521_v61, %v443_v21  ;;  %v552_v21 = vmul.f32 %v520_v2, %v1207_v19  ;;  %v517_v19 = vld [vmem:[%s1492_s7 + $0x28] sm:$0xff]  ;;  %v1295_v43 = vpop.f32.mrf.mxu2 }
 0x1c1   :  { %779 = vrcp.f32 %v1295_v43  ;;  %vm260_vm14 = vweird.f32 %v1295_v43 }
 0x1c5   :  { %v500_v28 = vpop.f32.mrf.mxu3 }
 0x1c7   :  { %v455_v29 = vpop.f32.mrf.mxu0 }
 0x1c8   :  { %v557_v46 = vmul.f32 %v525_v39, %v455_v29  ;;  %v572_v29 = vmul.f32 %v540_v62, %v500_v28  ;;  %v518_v28 = vld [vmem:[%s1492_s7 + $0x30] sm:$0xff]  ;;  %v532_v62 = vld [vmem:[%s1492_s7 + $0xa0] sm:$0xff] }
 0x1cd   :  { %v503_v31 = vpop.f32.mrf.mxu3 }
 0x1ce   :  { %v573_v1 = vmul.f32 %v541_v57, %v503_v31  ;;  %v213_v31 = vmul.f32 %v1229_v40, %v212_v60  ;;  %v567_v57 = vmul.f32 %v535_v45, %v1205_v18  ;;  %v533_v60 = vld [vmem:[%s1492_s7 + $0xa8] sm:$0xff]  ;;  %v578_v45 = vld [vmem:[%s1493_s8 + $0x10] sm:$0xff] }
 0x1cf   :  { %v458_v32 = vpop.f32.mrf.mxu0  ;;  %v513_v18 = vld [vmem:[%s1492_s7 + $0x8] sm:$0xff] }
 0x1d0   :  { %v558_v42 = vmul.f32 %v526_v36, %v458_v32  ;;  %v226_v32 = vmul.f32 %v1260_v63, %v1218_v33  ;;  %v537_v36 = vld [vmem:[%s1492_s7 + $0xc8] sm:$0xff]  ;;  %v214_v39 = vadd.f32 %v1229_v40, %v213_v31  ;;  %v564_v31 = vmul.f32 %v532_v62, %v1193_v12 }
 0x1d1   :  { %v581_v62 = vld [vmem:[%s1493_s8 + $0x28] sm:$0xff] }
 0x1d5   :  { %v506_v34 = vpop.f32.mrf.mxu3 }
 0x1d6   :  { %v574_v59 = vmul.f32 %v542_v50, %v506_v34  ;;  %v538_v34 = vld [vmem:[%s1492_s7 + $0xd0] sm:$0xff]  ;;  %v219_v50 = vand.u32 2147483647, %v1215_v30 }
 0x1d7   :  { %v461_v37 = vpop.f32.mrf.mxu0 }
 0x1d8   :  { %v559_v38 = vmul.f32 %v527_v35, %v461_v37  ;;  %v571_v35 = vmul.f32 %v539_v25, %v497_v26  ;;  %v551_v37 = vmul.f32 %v519_v23, %v1203_v17  ;;  %v536_v26 = vld [vmem:[%s1492_s7 + $0xc0] sm:$0xff]  ;;  %v1297_v17 = vpop.eup %777  ;;  %vm220_vm4 = vcmp.eq.f32.partialorder %v219_v50, 8.507059e+37 }
 0x1d9   :  { %v1349_v2 = vpop.eup %779  ;;  %v236_v25 = vand.u32 2147483648, %v1218_v33  ;;  %vm246_vm9 = vweird.f32 %v1297_v17 }
 0x1da   :  { %592 = vmatpush.msrb.mxu2 %v559_v38  ;;  %v570_v38 = vmul.f32 %v538_v34, %v1213_v24  ;;  %v550_v24 = vmul.f32 %v518_v28, %v1199_v15  ;;  %v549_v15 = vmul.f32 %v517_v19, %v1195_v13  ;;  %v534_v13 = vld [vmem:[%s1492_s7 + $0xb0] sm:$0xff]  ;;  %v256_v12 = vmul.f32 %v1349_v2, %v1295_v43  ;;  %vm247_vm11 = vmor %vm245_vm10, %vm246_vm9 }
 0x1db   :  { %v237_v28 = vor.u32 1.1754944e-38, %v236_v25  ;;  %vm261_vm13 = vweird.f32 %v1349_v2 }
 0x1dc   :  { %593 = vmatpush.msrb.mxu2 %v558_v42  ;;  %v227_v42 = vsub.f32 1.0, %v226_v32  ;;  %v576_v32 = vld [vmem:[%s1493_s8] sm:$0xff]  ;;  %vm262_vm15 = vmor %vm260_vm14, %vm261_vm13 }
 0x1dd   :  { %v509_v51 = vpop.f32.mrf.mxu3 }
 0x1de   :  { %v575_v54 = vmul.f32 %v543_v44, %v509_v51  ;;  %594 = vmatpush.msrb.mxu2 %v557_v46  ;;  %v221_v44 = vand.u32 2147483648, %v1215_v30  ;;  %v569_v46 = vmul.f32 %v537_v36, %v1211_v22  ;;  %v568_v51 = vmul.f32 %v536_v26, %v1209_v20  ;;  %v529_v36 = vld [vmem:[%s1492_s7 + $0x88] sm:$0xff]  ;;  %v661_v22 = vld [vmem:[%s1488_s3 + $0x58] sm:$0xff] }
 0x1df   :  { %v228_v20 = vmul.f32 %v1260_v63, %v227_v42  ;;  %v241_v30 = vmul.f32 %v1297_v17, %v1249_v56  ;;  %v561_v42 = vmul.f32 %v529_v36, %v1181_v6 }
 0x1e0   :  { %595 = vmatpush.msrb.mxu2 %v556_v52  ;;  %621 = vmatpush.msra.mxu1 %v575_v54  ;;  %v515_v52 = vld [vmem:[%s1492_s7 + $0x18] sm:$0xff]  ;;  %v218_v54 = vsel %vm1314_vm3, %v1229_v40, %v214_v39  ;;  %v566_v40 = vmul.f32 %v534_v13, %v1201_v16  ;;  %v565_v16 = vmul.f32 %v533_v60, %v1197_v14  ;;  %v664_v39 = vld [vmem:[%s1488_s3 + $0x70] sm:$0xff] }
 0x1e1   :  { %v547_v61 = vmul.f32 %v515_v52, %v1187_v9  ;;  %v545_v14 = vmul.f32 %v513_v18, %v1179_v5  ;;  %v656_v18 = vld [vmem:[%s1488_s3 + $0x30] sm:$0xff] }
 0x1e2   :  { %596 = vmatpush.msrb.mxu2 %v555_v58  ;;  %622 = vmatpush.msra.mxu1 %v574_v59  ;;  %v222_v58 = vor.u32 1.1754944e-38, %v221_v44  ;;  %v514_v59 = vld [vmem:[%s1492_s7 + $0x10] sm:$0xff] }
 0x1e3   :  { %v546_v9 = vmul.f32 %v514_v59, %v1183_v7  ;;  %v234_v7 = vand.u32 2147483647, %v1218_v33 }
 0x1e4   :  { %597 = vmatpush.msrb.mxu2 %v554_v0  ;;  %623 = vmatpush.msra.mxu1 %v573_v1  ;;  %v223_v11 = vsel %vm220_vm4, %v222_v58, %v218_v54  ;;  %v242_v0 = vsub.f32 1.0, %v241_v30  ;;  %v229_v1 = vadd.f32 %v1260_v63, %v228_v20  ;;  %v266_v20 = vand.u32 2147483648, %v1295_v43  ;;  %v579_v30 = vld [vmem:[%s1493_s8 + $0x18] sm:$0xff]  ;;  %v580_v58 = vld [vmem:[%s1493_s8 + $0x20] sm:$0xff] }
 0x1e5   :  { %v224_v23 = vmul.f32 %v1105_v41, %v223_v11  ;;  %v530_v41 = vld [vmem:[%s1492_s7 + $0x90] sm:$0xff]  ;;  %vm235_vm8 = vcmp.eq.f32.partialorder %v234_v7, 8.507059e+37  ;;  %v651_v7 = vld [vmem:[%s1488_s3 + $0x8] sm:$0xff] }
 0x1e6   :  { %598 = vmatpush.msrb.mxu2 %v553_v27  ;;  %624 = vmatpush.msra.mxu1 %v572_v29  ;;  %v512_v27 = vld [vmem:[%s1492_s7] sm:$0xff]  ;;  %v531_v29 = vld [vmem:[%s1492_s7 + $0x98] sm:$0xff]  ;;  %v243_v5 = vmul.f32 %v1297_v17, %v242_v0  ;;  %v233_v33 = vsel %vm1370_vm7, %v1260_v63, %v229_v1  ;;  %v562_v19 = vmul.f32 %v530_v41, %v1185_v8  ;;  %v257_v63 = vsub.f32 1.0, %v256_v12  ;;  %v655_v1 = vld [vmem:[%s1488_s3 + $0x28] sm:$0xff] }
 0x1e7   :  { %v251_v8 = vand.u32 2147483648, %v1249_v56 }
 0x1e8   :  { %599 = vmatpush.msrb.mxu2 %v552_v21  ;;  %625 = vmatpush.msra.mxu1 %v571_v35  ;;  %v544_v21 = vmul.f32 %v512_v27, %v1175_v3  ;;  %v563_v35 = vmul.f32 %v531_v29, %v1189_v10  ;;  %v238_v3 = vsel %vm235_vm8, %v237_v28, %v233_v33  ;;  %v528_v10 = vld [vmem:[%s1492_s7 + $0x80] sm:$0xff]  ;;  %v652_v27 = vld [vmem:[%s1488_s3 + $0x10] sm:$0xff]  ;;  %v583_v29 = vld [vmem:[%s1493_s8 + $0x38] sm:$0xff] }
 0x1e9   :  { %v244_v26 = vadd.f32 %v1297_v17, %v243_v5  ;;  %v239_v44 = vmul.f32 %v1117_v48, %v238_v3  ;;  %v560_v6 = vmul.f32 %v528_v10, %v1177_v4  ;;  %v258_v50 = vmul.f32 %v1349_v2, %v257_v63 }
 0x1ea   :  { %600 = vmatpush.msrb.mxu2 %v551_v37  ;;  %626 = vmatpush.msra.mxu1 %v570_v38  ;;  %v584_v37 = vmul.f32 %v576_v32, %v224_v23  ;;  %v665_v38 = vld [vmem:[%s1488_s3 + $0x78] sm:$0xff] }
 0x1eb   :  { %v248_v48 = vsel %vm247_vm11, %v1297_v17, %v244_v26  ;;  %v586_v4 = vmul.f32 %v578_v45, %v239_v44  ;;  %v259_v13 = vadd.f32 %v1349_v2, %v258_v50  ;;  %v660_v17 = vld [vmem:[%s1488_s3 + $0x50] sm:$0xff]  ;;  %v587_v59 = vmul.f32 %v579_v30, %v239_v44 }
 0x1ec   :  { %601 = vmatpush.msrb.mxu2 %v550_v24  ;;  %627 = vmatpush.msra.mxu1 %v569_v46  ;;  %v577_v24 = vld [vmem:[%s1493_s8 + $0x8] sm:$0xff]  ;;  %v249_v46 = vand.u32 2147483647, %v1249_v56  ;;  %v662_v56 = vld [vmem:[%s1488_s3 + $0x60] sm:$0xff] }
 0x1ed   :  { %v263_v60 = vsel %vm262_vm15, %v1349_v2, %v259_v13  ;;  %v582_v2 = vld [vmem:[%s1493_s8 + $0x30] sm:$0xff] }
 0x1ee   :  { %602 = vmatpush.msrb.mxu2 %v549_v15  ;;  %628 = vmatpush.msra.mxu1 %v568_v51  ;;  %v585_v15 = vmul.f32 %v577_v24, %v224_v23  ;;  %v252_v51 = vor.u32 1.1754944e-38, %v251_v8  ;;  %vm250_vm12 = vcmp.eq.f32.partialorder %v249_v46, 8.507059e+37 }
 0x1f0   :  { %603 = vmatpush.msrb.mxu2 %v548_v49  ;;  %629 = vmatpush.msra.mxu1 %v567_v57  ;;  %v253_v52 = vsel %vm250_vm12, %v252_v51, %v248_v48  ;;  %v264_v49 = vand.u32 2147483647, %v1295_v43  ;;  %v659_v57 = vld [vmem:[%s1488_s3 + $0x48] sm:$0xff] }
 0x1f1   :  { %v254_v54 = vmul.f32 %v1129_v55, %v253_v52  ;;  %v267_v55 = vor.u32 1.1754944e-38, %v266_v20 }
 0x1f2   :  { %604 = vmatpush.msrb.mxu2 %v547_v61  ;;  %630 = vmatpush.msra.mxu1 %v566_v40  ;;  %v658_v61 = vld [vmem:[%s1488_s3 + $0x40] sm:$0xff]  ;;  %vm265_vm0 = vcmp.eq.f32.partialorder %v264_v49, 8.507059e+37  ;;  %v657_v40 = vld [vmem:[%s1488_s3 + $0x38] sm:$0xff] }
 0x1f3   :  { %v588_v43 = vmul.f32 %v580_v58, %v254_v54  ;;  %v268_v11 = vsel %vm265_vm0, %v267_v55, %v263_v60 }
 0x1f4   :  { %605 = vmatpush.msrb.mxu2 %v546_v9  ;;  %631 = vmatpush.msra.mxu1 %v565_v16  ;;  %v269_v0 = vmul.f32 %v1140_v53, %v268_v11  ;;  %v589_v9 = vmul.f32 %v581_v62, %v254_v54  ;;  %v654_v16 = vld [vmem:[%s1488_s3 + $0x20] sm:$0xff]  ;;  %v653_v53 = vld [vmem:[%s1488_s3 + $0x18] sm:$0xff] }
 0x1f6   :  { %606 = vmatpush.msrb.mxu2 %v545_v14  ;;  %632 = vmatpush.msra.mxu1 %v564_v31  ;;  %v590_v25 = vmul.f32 %v582_v2, %v269_v0  ;;  %v591_v23 = vmul.f32 %v583_v29, %v269_v0  ;;  %v650_v14 = vld [vmem:[%s1488_s3] sm:$0xff]  ;;  %s807_s3 = smov [#allocation2]  }
 0x1f7   :  { %s711_s21 = sshll.u32 %s807_s3, 4  ;;  %s712_s21 = int_to_ptr.vmem [resolvable:$true] %s711_s21 }
 0x1f8   :  { %607 = vmatpush.msrb.mxu2 %v544_v21  ;;  %633 = vmatpush.msra.mxu1 %v563_v35 }
 0x1f9   :  { %608 = vmatmul.f32.vlgmr.msrb.gmra.mxu2 %v584_v37 }
 0x1fa   :  { %634 = vmatpush.msra.mxu1 %v562_v19  ;;  %670 = vmatpush.msra.mxu2 %v665_v38  ;;  %v764_v38 = vld [vmem:[%s1489_s4] ss:$0 sm:$0xff]  ;;  %s808_s4 = smov 128  }
 0x1fc   :  { %635 = vmatpush.msra.mxu1 %v561_v42  ;;  %671 = vmatpush.msra.mxu2 %v664_v39 }
 0x1fe   :  { %636 = vmatpush.msra.mxu1 %v560_v6  ;;  %672 = vmatpush.msra.mxu2 %v663_v47 }
 0x1ff   :  { %637 = vmatmul.f32.vlgmr.msra.gmra.mxu1 %v585_v15 }
 0x200   :  { %673 = vmatpush.msra.mxu2 %v662_v56 }
 0x201   :  { %611 = vmatmul.f32.gmra.mxu2 %v586_v4 }
 0x202   :  { %674 = vmatpush.msra.mxu2 %v661_v22 }
 0x204   :  { %675 = vmatpush.msra.mxu2 %v660_v17 }
 0x206   :  { %676 = vmatpush.msra.mxu2 %v659_v57 }
 0x207   :  { %640 = vmatmul.f32.gmra.mxu1 %v587_v59 }
 0x208   :  { %677 = vmatpush.msra.mxu2 %v658_v61 }
 0x209   :  { %614 = vmatmul.f32.gmra.mxu2 %v588_v43 }
 0x20a   :  { %678 = vmatpush.msra.mxu2 %v657_v40 }
 0x20c   :  { %679 = vmatpush.msra.mxu2 %v656_v18 }
 0x20e   :  { %680 = vmatpush.msra.mxu2 %v655_v1 }
 0x20f   :  { %643 = vmatmul.f32.gmra.mxu1 %v589_v9 }
 0x210   :  { %681 = vmatpush.msra.mxu2 %v654_v16 }
 0x211   :  { %617 = vmatmul.f32.gmra.mxu2 %v590_v25 }
 0x212   :  { %682 = vmatpush.msra.mxu2 %v653_v53 }
 0x214   :  { %683 = vmatpush.msra.mxu2 %v652_v27 }
 0x216   :  { %684 = vmatpush.msra.mxu2 %v651_v7 }
 0x217   :  { %646 = vmatmul.f32.gmra.mxu1 %v591_v23 }
 0x218   :  { %685 = vmatpush.msra.mxu2 %v650_v14 }
 0x27c   :  { %v609_v31 = vpop.f32.mrf.mxu2  ;;  %v638_v32 = vpop.f32.mrf.mxu1 }
 0x27d   :  { %v639_v34 = vadd.f32 %v638_v32, %v609_v31 }
 0x27f   :  { %686 = vmatmul.f32.vlgmr.msra.gmra.mxu2 %v639_v34 }
 0x284   :  { %v612_v41 = vpop.f32.mrf.mxu2  ;;  %v641_v5 = vpop.f32.mrf.mxu1 }
 0x285   :  { %v642_v12 = vadd.f32 %v641_v5, %v612_v41 }
 0x287   :  { %689 = vmatmul.f32.gmra.mxu2 %v642_v12 }
 0x28c   :  { %v615_v33 = vpop.f32.mrf.mxu2  ;;  %v644_v21 = vpop.f32.mrf.mxu1 }
 0x28d   :  { %v645_v35 = vadd.f32 %v644_v21, %v615_v33 }
 0x28f   :  { %692 = vmatmul.f32.gmra.mxu2 %v645_v35 }
 0x294   :  { %v618_v28 = vpop.f32.mrf.mxu2  ;;  %v647_v36 = vpop.f32.mrf.mxu1 }
 0x295   :  { %v648_v37 = vadd.f32 %v647_v36, %v618_v28 }
 0x297   :  { %695 = vmatmul.f32.gmra.mxu2 %v648_v37 }
 0x302   :  { %v687_v19 = vpop.f32.mrf.mxu2 }
 0x303   :  { %v688_v3 = vadd.f32 %v764_v38, %v687_v19 }
 0x305   :  { %v699_v10 = vmax.f32 %v688_v3, 0.0 }
 0x307   :  { %703 = vst [vmem:[#allocation2] sm:$0xff] %v699_v10 }
 0x30a   :  { %v690_v63 = vpop.f32.mrf.mxu2 }
 0x30b   :  { %v691_v26 = vadd.f32 %v764_v38, %v690_v63 }
 0x30d   :  { %v700_v39 = vmax.f32 %v691_v26, 0.0 }
 0x30f   :  { %704 = vst [vmem:[#allocation2 + $0x8] sm:$0xff] %v700_v39 }
 0x312   :  { %v693_v42 = vpop.f32.mrf.mxu2 }
 0x313   :  { %v694_v8 = vadd.f32 %v764_v38, %v693_v42 }
 0x315   :  { %v701_v24 = vmax.f32 %v694_v8, 0.0 }
 0x317   :  { %705 = vst [vmem:[#allocation2 + $0x10] sm:$0xff] %v701_v24 }
 0x31a   :  { %v696_v44 = vpop.f32.mrf.mxu2 }
 0x31b   :  { %v697_v46 = vadd.f32 %v764_v38, %v696_v44 }
 0x31d   :  { %v702_v47 = vmax.f32 %v697_v46, 0.0 }
 0x31f   :  { %706 = vst [vmem:[#allocation2 + $0x18] sm:$0xff] %v702_v47 }
 0x320   :  { %719 = dma.vmem_to_hbm [thread:$0]  %s712_s21, 512, %s714_s24, [#allocation3], %s808_s4, %s808_s4, %s809_s25  }
 0x321   :  { %805 = dma.done.wait [#allocation3], 512  }
 0x322   :  { %806 = vsyncadd [#allocation3], 4294966784 }
 0x323   :  { %724 = vsyncpa [#allocation3], 1 }

</bundles_post_ra>
